<compile_context>
chip_gen: v7x
topology: tpu7x:2x2x1
jax: 0.10.0
libtpu: 0.0.40
codegen_flags: <defaults>
</compile_context>

<pallas_src>
import functools

import jax
import jax.numpy as jnp
from jax import lax
from jax.experimental import pallas as pl
from jax.experimental.pallas import tpu as pltpu


def _round_up(x, m):
    return (x + m - 1) // m * m


def _sublane_multiple(dtype):
    # Second-minor block dim must be a multiple of the dtype's sublane packing
    # (8 for 4-byte, 16 for 2-byte, 32 for 1-byte types) unless it spans the
    # full array extent.
    return {4: 8, 2: 16, 1: 32}.get(jnp.dtype(dtype).itemsize, 8)


def _vse_tile_kernel(img_ref, cap_ref, rowmax_ref, colmax_ref, *, n_valid, padded):
    """One (tm, tn) score tile -> masked per-row / per-column maxes.

    img_ref:    (tm, D) image rows of row-tile i   (native dtype, e.g. bf16)
    cap_ref:    (tn, D) caption rows of col-tile j
    rowmax_ref: (tm, 1) per-row    max of masked scores for this tile
    colmax_ref: (1, tn) per-column max of masked scores for this tile
    """
    i = pl.program_id(0)
    j = pl.program_id(1)
    tm = img_ref.shape[0]
    tn = cap_ref.shape[0]

    # scores[r, c] = <image_r, caption_c>: contract D of BOTH operands on the
    # MXU (A @ B.T without materializing a transposed caption tile), f32 acc.
    scores = lax.dot_general(
        img_ref[...], cap_ref[...],
        dimension_numbers=(((1,), (1,)), ((), ())),
        preferred_element_type=jnp.float32)                        # (tm, tn)

    # Mask positives (global diagonal) -- and, if the batch was padded up to a
    # tile multiple, the padded rows / columns -- to -inf so they can never win
    # the max.  relu commutes with max, so the hinge clamp / diag subtraction
    # happen once per row/column in the tiny epilogue, not per element here.
    row_ids = lax.broadcasted_iota(jnp.int32, (tm, tn), 0)
    col_ids = lax.broadcasted_iota(jnp.int32, (tm, tn), 1)
    if padded:
        gr = row_ids + i * tm
        gc = col_ids + j * tn
        invalid = (gr == gc) | (gr >= n_valid) | (gc >= n_valid)
    else:
        invalid = (row_ids - col_ids) == (j * tn - i * tm)
    masked = jnp.where(invalid, jnp.float32(-jnp.inf), scores)

    rowmax_ref[...] = jnp.max(masked, axis=1, keepdims=True)       # (tm, 1)
    colmax_ref[...] = jnp.max(masked, axis=0, keepdims=True)       # (1, tn)


def vse_loss(normalized_images, normalized_captions, margin, *, tile=None):
    """VSE hinge loss.  Embeddings may be float32 or bfloat16 (bf16 feeds the
    MXU natively; accumulation is always f32)."""
    assert normalized_images.shape == normalized_captions.shape
    assert normalized_images.dtype == normalized_captions.dtype
    B, D = normalized_images.shape
    dtype = normalized_images.dtype
    sm = _sublane_multiple(dtype)
    itemsize = jnp.dtype(dtype).itemsize

    if tile is None:
        # Largest row tile whose two double-buffered (tile, D) embedding
        # streams stay well inside the default scoped-VMEM window on every
        # generation (v5e 16 MiB, v6e 32 MiB, v7x 32 of 64 MiB physical);
        # capped at 256 so a score tile is a handful of vregs.
        budget = 8 * 1024 * 1024
        tile = min(256, max(sm, budget // max(1, 4 * D * itemsize)))
    tile = max(sm, (int(tile) // sm) * sm)
    tile = min(tile, _round_up(B, sm))

    B_pad = _round_up(B, tile)
    n_t = B_pad // tile
    padded = B_pad != B

    imgs, caps = normalized_images, normalized_captions
    if padded:
        pad = B_pad - B
        imgs = jnp.pad(imgs, ((0, pad), (0, 0)))
        caps = jnp.pad(caps, ((0, pad), (0, 0)))

    kernel = functools.partial(_vse_tile_kernel, n_valid=B, padded=padded)

    row_part, col_part = pl.pallas_call(
        kernel,
        grid=(n_t, n_t),
        in_specs=[
            pl.BlockSpec((tile, D), lambda i, j: (i, 0)),   # image rows, tile i
            pl.BlockSpec((tile, D), lambda i, j: (j, 0)),   # caption rows, tile j
        ],
        out_shape=(
            jax.ShapeDtypeStruct((n_t, n_t, tile, 1), jnp.float32),  # row maxes
            jax.ShapeDtypeStruct((n_t, n_t, 1, tile), jnp.float32),  # col maxes
        ),
        out_specs=(
            pl.BlockSpec((None, None, tile, 1), lambda i, j: (i, j, 0, 0)),
            pl.BlockSpec((None, None, 1, tile), lambda i, j: (i, j, 0, 0)),
        ),
        # Stateless per-tile partials -> both grid axes are truly parallel
        # (megacore sharding on v7x; no-op on single-core v5e / v6e).
        compiler_params=pltpu.CompilerParams(
            dimension_semantics=("parallel", "parallel")),
    )(imgs, caps)

    # Tiny O(B) epilogue on already-reduced partials: cross-tile max, diagonal
    # from sum(img * cap, axis=1), hinge, sum.
    row_max = jnp.max(row_part[..., 0], axis=1).reshape(B_pad)[:B]       # over j tiles
    col_max = jnp.max(col_part[:, :, 0, :], axis=0).reshape(B_pad)[:B]   # over i tiles
    diag = jnp.sum(normalized_images.astype(jnp.float32)
                   * normalized_captions.astype(jnp.float32), axis=1)    # (B,)
    margin = jnp.float32(margin)
    loss = (jnp.sum(jnp.maximum(margin + row_max - diag, 0.0))
            + jnp.sum(jnp.maximum(margin + col_max - diag, 0.0)))
    return loss


def _vse_loss_ref(images, captions, margin):
    # Pure-JAX reference (matches the PyTorch module).
    scores = jnp.dot(images, captions.T, precision=lax.Precision.HIGHEST)
    diag = jnp.diag(scores)[:, None]
    cost_caption = jnp.maximum(margin + scores - diag, 0.0)
    cost_image = jnp.maximum(margin + scores - diag.T, 0.0)
    eye = jnp.eye(scores.shape[0], dtype=bool)
    cost_caption = jnp.where(eye, 0.0, cost_caption)
    cost_image = jnp.where(eye, 0.0, cost_image)
    return jnp.max(cost_caption, axis=1).sum() + jnp.max(cost_image, axis=0).sum()


if __name__ == "__main__":
    margin = 0.2

    def make_embeddings(seed, B, D, dtype):
        k_img, k_cap = jax.random.split(jax.random.PRNGKey(seed))
        img = jax.random.normal(k_img, (B, D), dtype=jnp.float32)
        cap = jax.random.normal(k_cap, (B, D), dtype=jnp.float32)
        img = img / jnp.linalg.norm(img, axis=1, keepdims=True)
        cap = cap / jnp.linalg.norm(cap, axis=1, keepdims=True)
        # Round to bf16-representable values so the f32 reference and the MXU
        # kernel compute near-identical scores regardless of matmul precision
        # defaults.
        img = img.astype(jnp.bfloat16).astype(dtype)
        cap = cap.astype(jnp.bfloat16).astype(dtype)
        return img, cap

    # Case 1: bf16 embeddings, single tile, no padding (B=16, D=32).
    img, cap = make_embeddings(0, 16, 32, jnp.bfloat16)
    loss = jax.block_until_ready(vse_loss(img, cap, margin))
    ref = _vse_loss_ref(img.astype(jnp.float32), cap.astype(jnp.float32), margin)
    assert jnp.allclose(loss, ref, atol=1e-4, rtol=1e-4), (loss, ref)

    # Case 2: f32 embeddings, 3x3 grid of 8-row tiles with batch padding
    # (B=20 -> padded to 24), exercising the tiled + masked path.
    img, cap = make_embeddings(1, 20, 32, jnp.float32)
    loss = jax.block_until_ready(vse_loss(img, cap, margin, tile=8))
    ref = _vse_loss_ref(img, cap, margin)
    assert jnp.allclose(loss, ref, atol=1e-4, rtol=1e-4), (loss, ref)

    print("KERNEL_OK")
</pallas_src>

<mosaic_0001>
module attributes {stable_mosaic.version = 11 : i64} {
  func.func @_vse_tile_kernel(%arg0: i32, %arg1: i32, %arg2: memref<16x32xbf16, #tpu.memory_space<vmem>>, %arg3: memref<16x32xbf16, #tpu.memory_space<vmem>>, %arg4: memref<1x1x16x1xf32, #tpu.memory_space<vmem>>, %arg5: memref<1x1x1x16xf32, #tpu.memory_space<vmem>>) attributes {dimension_semantics = [#tpu.dimension_semantics<parallel>, #tpu.dimension_semantics<parallel>], iteration_bounds = array<i64: 1, 1>, scalar_prefetch = 0 : i64, scratch_operands = 0 : i64, tpu.core_type = #tpu.core_type<tc>, window_params = [{transform_indices = @transform_0, window_bounds = array<i64: 16, 32>}, {transform_indices = @transform_1, window_bounds = array<i64: 16, 32>}, {transform_indices = @transform_2, window_bounds = array<i64: 1, 1, 16, 1>}, {transform_indices = @transform_3, window_bounds = array<i64: 1, 1, 1, 16>}]} {
    %c0 = arith.constant 0 : index
    %c0_0 = arith.constant 0 : index
    %0 = vector.load %arg2[%c0, %c0_0] : memref<16x32xbf16, #tpu.memory_space<vmem>>, vector<16x32xbf16>
    %c0_1 = arith.constant 0 : index
    %c0_2 = arith.constant 0 : index
    %1 = vector.load %arg3[%c0_1, %c0_2] : memref<16x32xbf16, #tpu.memory_space<vmem>>, vector<16x32xbf16>
    %cst = arith.constant dense<0.000000e+00> : vector<16x16xf32>
    %2 = tpu.matmul %0, %1, %cst {dimension_numbers = #tpu.dot_dimension_numbers<[1], [1], [0], [0], [0, 0, 1, 0], [], []>} : vector<16x32xbf16>, vector<16x32xbf16>, vector<16x16xf32> -> vector<16x16xf32>
    %3 = tpu.iota {dimensions = array<i32: 0>} : vector<16x16xi32>
    %4 = tpu.iota {dimensions = array<i32: 1>} : vector<16x16xi32>
    %5 = arith.subi %3, %4 : vector<16x16xi32>
    %c16_i32 = arith.constant 16 : i32
    %6 = arith.muli %arg1, %c16_i32 : i32
    %c16_i32_3 = arith.constant 16 : i32
    %7 = arith.muli %arg0, %c16_i32_3 : i32
    %8 = arith.subi %6, %7 : i32
    %9 = vector.broadcast %8 : i32 to vector<16x16xi32>
    %10 = arith.cmpi eq, %5, %9 : vector<16x16xi32>
    %cst_4 = arith.constant 0xFF800000 : f32
    %11 = vector.broadcast %cst_4 : f32 to vector<16x16xf32>
    %12 = arith.select %10, %11, %2 : vector<16x16xi1>, vector<16x16xf32>
    %cst_5 = arith.constant dense<0xFF800000> : vector<16xf32>
    %13 = vector.multi_reduction <maximumf>, %12, %cst_5 [1] : vector<16x16xf32> to vector<16xf32>
    %14 = vector.shape_cast %13 : vector<16xf32> to vector<16x1xf32>
    %c0_6 = arith.constant 0 : index
    %c0_7 = arith.constant 0 : index
    %c0_8 = arith.constant 0 : index
    %c0_9 = arith.constant 0 : index
    %15 = vector.load %arg4[%c0_6, %c0_7, %c0_8, %c0_9] : memref<1x1x16x1xf32, #tpu.memory_space<vmem>>, vector<1x1x16x1xf32>
    %16 = vector.shape_cast %15 : vector<1x1x16x1xf32> to vector<16x1xf32>
    %17 = vector.shape_cast %14 : vector<16x1xf32> to vector<1x1x16x1xf32>
    tpu.vector_store %arg4[%c0_6, %c0_7, %c0_8, %c0_9], %17 {strides = array<i32>} : memref<1x1x16x1xf32, #tpu.memory_space<vmem>>, vector<1x1x16x1xf32>,
    %cst_10 = arith.constant dense<0xFF800000> : vector<16xf32>
    %18 = vector.multi_reduction <maximumf>, %12, %cst_10 [0] : vector<16x16xf32> to vector<16xf32>
    %19 = vector.shape_cast %18 : vector<16xf32> to vector<1x16xf32>
    %c0_11 = arith.constant 0 : index
    %c0_12 = arith.constant 0 : index
    %c0_13 = arith.constant 0 : index
    %c0_14 = arith.constant 0 : index
    %20 = vector.load %arg5[%c0_11, %c0_12, %c0_13, %c0_14] : memref<1x1x1x16xf32, #tpu.memory_space<vmem>>, vector<1x1x1x16xf32>
    %21 = vector.shape_cast %20 : vector<1x1x1x16xf32> to vector<1x16xf32>
    %22 = vector.shape_cast %19 : vector<1x16xf32> to vector<1x1x1x16xf32>
    tpu.vector_store %arg5[%c0_11, %c0_12, %c0_13, %c0_14], %22 {strides = array<i32>} : memref<1x1x1x16xf32, #tpu.memory_space<vmem>>, vector<1x1x1x16xf32>,
    return
  }
  func.func @transform_0(%arg0: i32, %arg1: i32) -> (i32, i32) {
    %c0_i32 = arith.constant 0 : i32
    %c0_i32_0 = arith.constant 0 : i32
    return %arg0, %c0_i32 : i32, i32
  }
  func.func @transform_1(%arg0: i32, %arg1: i32) -> (i32, i32) {
    %c0_i32 = arith.constant 0 : i32
    %c0_i32_0 = arith.constant 0 : i32
    return %arg1, %c0_i32 : i32, i32
  }
  func.func @transform_2(%arg0: i32, %arg1: i32) -> (i32, i32, i32, i32) {
    %c0_i32 = arith.constant 0 : i32
    %c0_i32_0 = arith.constant 0 : i32
    %c0_i32_1 = arith.constant 0 : i32
    return %arg0, %arg1, %c0_i32, %c0_i32_0 : i32, i32, i32, i32
  }
  func.func @transform_3(%arg0: i32, %arg1: i32) -> (i32, i32, i32, i32) {
    %c0_i32 = arith.constant 0 : i32
    %c0_i32_0 = arith.constant 0 : i32
    %c0_i32_1 = arith.constant 0 : i32
    return %arg0, %arg1, %c0_i32, %c0_i32_0 : i32, i32, i32, i32
  }
}

</mosaic_0001>

<bundles_post_ra>
// kernel: tpu_custom_call.1
= control target key start
LH: loop header
LB: loop body
LE: loop exit
PB: predicated region body
PF: predicated region fallthrough
CT: control target
= control target key end

     0   :  { %9 = vsyncpa [#allocation3], 0  ;;  %s320_s0 = inlined_call_operand.hbm [shape: bf16[16,32], index: 0, kind: input, shape index: {}]   ;;  %s321_s1 = inlined_call_operand.hbm [shape: bf16[16,32], index: 1, kind: input, shape index: {}]   ;;  %s322_s2 = inlined_call_operand.vmem [shape: f32[1,1,16,1], index: 2, kind: output, shape index: {0}]   ;;  %s323_s3 = inlined_call_operand.hbm [shape: f32[1,1,1,16], index: 3, kind: output, shape index: {1}]  }
   0x1   :  { %10 = vsyncpa [#allocation6], 0 }
   0x2   :  { %11 = vsyncpa [#allocation4], 0  ;;  %s251_s12 = smov [#allocation2]   ;;  %s179_s16 = scalar_lea.hbm %s320_s0, 128 }
   0x3   :  { %s17_s13 = sshll.u32 %s251_s12, 4  ;;  %p180_p0 = scmp.ne.s32.totalorder %s320_s0, %s179_s16  ;;  %s18_s13 = int_to_ptr.vmem [resolvable:$true] %s17_s13 }
   0x4   :  { %p183_p1 = scmp.lt.u32.totalorder %s179_s16, %s320_s0 }
   0x6   :  { %p185_p2 = pnand %p183_p1, %p180_p0 }
   0x8   :  { %188 = shalt.err (!%p185_p2)
}
   0x9   :  { %s189_s21 = scalar_lea.vmem %s18_s13, 128  ;;  %p194_p4 = scmp.lt.s32.totalorder %s18_s13, %s18_s13 }
   0xa   :  { %p190_p3 = scmp.ne.s32.totalorder %s18_s13, %s189_s21  ;;  %p195_p5 = scmp.lt.s32.totalorder %s189_s21, %s189_s21 }
   0xc   :  { %p196_p6 = por %p195_p5, %p194_p4 }
   0xe   :  { %p197_p7 = pnand %p196_p6, %p190_p3 }
  0x10   :  { %200 = shalt.err (!%p197_p7)
}
  0x11   :  { %s252_s22 = smov 64   ;;  %s253_s23 = smov 4  }
  0x12   :  { %23 = dma.hbm_to_vmem [thread:$0]  %s320_s0, 128, %s18_s13, [#allocation3], %s252_s22, %s252_s22, %s253_s23  }
  0x13   :  { %s254_s26 = smov [#allocation5]   ;;  %s201_s30 = scalar_lea.hbm %s321_s1, 128 }
  0x14   :  { %s29_s27 = sshll.u32 %s254_s26, 4  ;;  %p202_p8 = scmp.ne.s32.totalorder %s321_s1, %s201_s30  ;;  %s30_s27 = int_to_ptr.vmem [resolvable:$true] %s29_s27 }
  0x15   :  { %p205_p9 = scmp.lt.u32.totalorder %s201_s30, %s321_s1 }
  0x17   :  { %p207_p10 = pnand %p205_p9, %p202_p8 }
  0x19   :  { %210 = shalt.err (!%p207_p10)
}
  0x1a   :  { %s211_s8 = scalar_lea.vmem %s30_s27, 128  ;;  %p216_p12 = scmp.lt.s32.totalorder %s30_s27, %s30_s27 }
  0x1b   :  { %p212_p11 = scmp.ne.s32.totalorder %s30_s27, %s211_s8  ;;  %p217_p13 = scmp.lt.s32.totalorder %s211_s8, %s211_s8 }
  0x1d   :  { %p218_p0 = por %p217_p13, %p216_p12 }
  0x1f   :  { %p219_p1 = pnand %p218_p0, %p212_p11 }
  0x21   :  { %222 = shalt.err (!%p219_p1)
}
  0x22   :  { %35 = dma.hbm_to_vmem [thread:$0]  %s321_s1, 128, %s30_s27, [#allocation6], %s252_s22, %s252_s22, %s253_s23  }
  0x23   :  { %245 = dma.done.wait [#allocation3], 128  }
  0x24   :  { %246 = vsyncadd [#allocation3], 4294967168 }
  0x25   :  { %247 = dma.done.wait [#allocation6], 128  }
  0x26   :  { %248 = vsyncadd [#allocation6], 4294967168  ;;  %v255_v0 = vmov 0.0   ;;  %vm256_vm0 = vmmov 0   ;;  %vm57_vm1 = vcmask 261120   ;;  %v177_v1 = vld [vmem:[#allocation5] sm:$0xff]   ;;  %v105_v4 = vlaneseq }
  0x27   :  { %164 = vmatprep.subr.bf16.mxu0 %v255_v0  ;;  %166 = vmatprep.mubr.msk.bf16.mxu0 %vm256_vm0, %v255_v0  ;;  %v62_v2 = vsel %vm57_vm1, %v177_v1, 0  ;;  %v178_v3 = vld [vmem:[#allocation2] sm:$0xff]   ;;  %vm120_vm3 = vcmask 130048   ;;  %vm137_vm5 = vcmask 122880   ;;  %s257_s1 = smov [#allocation7]  }
  0x28   :  { %165 = vmatpush3.bf16.xpose.msra.mxu0 %v62_v2  ;;  %v106_v5 = vshrl.u32 %v105_v4, 7  ;;  %v109_v6 = vand.u32 127, %v105_v4  ;;  %s147_s10 = sshll.u32 %s257_s1, 4  ;;  %s148_s10 = int_to_ptr.vmem [resolvable:$true] %s147_s10 }
  0x29   :  { %s223_s11 = scalar_lea.vmem %s148_s10, 16  ;;  %s227_s12 = scalar_lea.vmem %s148_s10, 32 }
  0x2a   :  { %v107_v7 = vadd.s32 8, %v106_v5  ;;  %v110_v8 = vsub.s32 %v106_v5, %v109_v6  ;;  %p224_p2 = scmp.ne.s32.totalorder %s148_s10, %s223_s11  ;;  %p228_p3 = scmp.lt.s32.totalorder %s148_s10, %s148_s10 }
  0x2b   :  { %p229_p4 = scmp.lt.s32.totalorder %s227_s12, %s223_s11 }
  0x2c   :  { %v111_v9 = vsub.s32 %v107_v7, %v109_v6  ;;  %vm116_vm2 = vcmp.eq.s32.totalorder %v110_v8, 0 }
  0x2d   :  { %p230_p5 = por %p229_p4, %p228_p3 }
  0x2e   :  { %vm117_vm4 = vcmp.eq.s32.totalorder %v111_v9, 0 }
  0x2f   :  { %167 = vmatmul.mubr.msk.bf16.vlgmr.msra.gmra.mrb[0].mxu0 %vm57_vm1, %v178_v3  ;;  %p231_p6 = pnand %p230_p5, %p224_p2 }
 0x102   :  { %v98_v10 = vpop.f32.mrb[0].mxu0 }
 0x103   :  { %v118_v11 = vsel %vm116_vm2, -inf, %v98_v10  ;;  %v168_v12 = vpop.f32.mrb[1].mxu0 }
 0x104   :  { %v101_v13 = vpop.f32.mrb[2].mxu0  ;;  %v121_v14 = vsel %vm120_vm3, %v118_v11, -inf }
 0x105   :  { %v119_v15 = vsel %vm117_vm4, -inf, %v101_v13  ;;  %122 = vmax.xlane.f32.xlu0 %v121_v14  ;;  %v169_v16 = vpop.f32.mrb[3].mxu0 }
 0x106   :  { %v124_v17 = vsel %vm120_vm3, %v119_v15, -inf }
 0x107   :  { %v130_v18 = vmax.f32 %v121_v14, %v124_v17 }
 0x109   :  { %125 = vmax.xlane.f32.xlu0 %v124_v17  ;;  %v131_v19 = vrot.slane %v130_v18, 4 }
 0x10b   :  { %v132_v20 = vmax.f32 %v130_v18, %v131_v19 }
 0x10d   :  { %v133_v21 = vrot.slane %v132_v20, 2 }
 0x10f   :  { %v134_v22 = vmax.f32 %v132_v20, %v133_v21 }
 0x111   :  { %v135_v23 = vrot.slane %v134_v22, 1 }
 0x113   :  { %v136_v24 = vmax.f32 %v134_v22, %v135_v23 }
 0x115   :  { %138 = vst.msk [vmem:[#allocation7] sm:$0x1] %vm137_vm5, %v136_v24 }
 0x116   :  { %234 = shalt.err (!%p231_p6)
}
 0x117   :  { %s235_s15 = scalar_lea.hbm %s323_s3, 16 }
 0x118   :  { %p236_p7 = scmp.ne.s32.totalorder %s323_s3, %s235_s15  ;;  %p239_p8 = scmp.lt.u32.totalorder %s235_s15, %s323_s3 }
 0x11a   :  { %p241_p9 = pnand %p239_p8, %p236_p7 }
 0x11c   :  { %244 = shalt.err (!%p241_p9)
}
 0x11d   :  { %150 = dma.vmem_to_hbm [thread:$0]  %s148_s10, 16, %s323_s3, [#allocation4]   ;;  %vm127_vm6 = vcmask 7168  }
 0x192   :  { %v123_v25 = vpop.xlane.xlu0 %122 }
 0x193   :  { %128 = vst.msk [vmem:[%s322_s2] sm:$0xff] %vm127_vm6, %v123_v25 }
 0x196   :  { %v126_v26 = vpop.xlane.xlu0 %125 }
 0x197   :  { %129 = vst.msk [vmem:[%s322_s2 + $0x8] sm:$0xff] %vm127_vm6, %v126_v26 }
 0x198   :  { %249 = dma.done.wait [#allocation4], 16  }
 0x199   :  { %250 = vsyncadd [#allocation4], 4294967280 }
 0x19a   :  { %156 = vsyncpa [#allocation3], 1 }
 0x19b   :  { %157 = vsyncpa [#allocation6], 1 }
 0x19c   :  { %158 = vsyncpa [#allocation4], 1 }

</bundles_post_ra>
